<compile_context>
chip_gen: v5e
topology: v5e:2x2
jax: 0.10.0
libtpu: 0.0.40
codegen_flags: <defaults>
</compile_context>

<pallas_src>
import functools

import jax
import jax.numpy as jnp
from jax.experimental import pallas as pl
from jax.experimental.pallas import tpu as pltpu

K_HOPS = 2      # DGL TAGConv default number of hops
F_PAD = 128     # lane-dense padded feature width
SUB = 8         # sublane multiple for the node dimension


def tagcn_kernel(adj_ref, h_ref, *refs, n_layers, f_pad):
    """Fused TAGCN stack, everything VMEM-resident.

    adj_ref : (Np, Np)              normalized adjacency Â
    h_ref   : (Np, f_pad)           zero-padded input features
    refs    : w_0..w_{L-1}          each ((K+1)*f_pad, f_pad)  hop-block-aligned
              b_0..b_{L-1}          each (1, f_pad)
              out_ref               (Np, f_pad)
    """
    w_refs = refs[0:n_layers]
    b_refs = refs[n_layers:2 * n_layers]
    out_ref = refs[2 * n_layers]

    adj = adj_ref[...]
    h = h_ref[...]
    for li in range(n_layers):
        w = w_refs[li]
        # concat([h, Âh, Â²h]) @ W  ==  sum_k  hop_k @ W[k-th 128-block]
        # -> hops flow straight from vregs into the MXU, no concat scratch.
        hop = h
        out = jnp.dot(hop, w[0:f_pad, :],
                      preferred_element_type=jnp.float32) + b_refs[li][...]
        for k in range(1, K_HOPS + 1):
            hop = jnp.dot(adj, hop, preferred_element_type=jnp.float32)
            out = out + jnp.dot(hop, w[k * f_pad:(k + 1) * f_pad, :],
                                preferred_element_type=jnp.float32)
        if li != n_layers - 1:
            out = jnp.maximum(out, 0.0)   # ReLU on all but the last layer
        h = out
    out_ref[...] = h


def _round_up(x, m):
    return (x + m - 1) // m * m


def _pad_features(x, n_pad, f_pad):
    n, f = x.shape
    return jnp.zeros((n_pad, f_pad), jnp.float32).at[:n, :f].set(x)


def _pad_adj(adj, n_pad):
    n = adj.shape[0]
    return jnp.zeros((n_pad, n_pad), jnp.float32).at[:n, :n].set(adj)


def _pad_params(w, b, f_pad):
    """Pad ((K+1)*f_in, f_out) weights to ((K+1)*f_pad, f_pad), hop-block aligned."""
    f_in = w.shape[0] // (K_HOPS + 1)
    f_out = w.shape[1]
    wp = jnp.zeros(((K_HOPS + 1) * f_pad, f_pad), jnp.float32)
    for k in range(K_HOPS + 1):
        wp = wp.at[k * f_pad:k * f_pad + f_in, :f_out].set(
            w[k * f_in:(k + 1) * f_in, :])
    bp = jnp.zeros((1, f_pad), jnp.float32).at[0, :f_out].set(b)
    return wp, bp


def tagcn_forward(adj_norm, features, params):
    """TAGCN.forward: whole stack fused in one pallas_call."""
    n = features.shape[0]
    n_layers = len(params)
    n_classes = params[-1][0].shape[1]
    n_pad = _round_up(n, SUB)

    adj_pad = _pad_adj(adj_norm, n_pad)
    h_pad = _pad_features(features, n_pad, F_PAD)
    w_pads, b_pads = [], []
    for (w, b) in params:
        wp, bp = _pad_params(w, b, F_PAD)
        w_pads.append(wp)
        b_pads.append(bp)

    kernel = functools.partial(tagcn_kernel, n_layers=n_layers, f_pad=F_PAD)
    out_pad = pl.pallas_call(
        kernel,
        out_shape=jax.ShapeDtypeStruct((n_pad, F_PAD), jnp.float32),
        # Small graph: every operand lives fully in VMEM (total << 1 MiB).
        in_specs=[pl.BlockSpec(memory_space=pltpu.MemorySpace.VMEM)]
        * (2 + 2 * n_layers),
        out_specs=pl.BlockSpec(memory_space=pltpu.MemorySpace.VMEM),
    )(adj_pad, h_pad, *w_pads, *b_pads)

    # Slice sublane / lane padding back off.
    return out_pad[:n, :n_classes]


def tagcn_reference(adj_norm, features, params):
    """Plain-JAX reference for correctness checking (unpadded)."""
    h = features
    last = len(params) - 1
    for i, (w, b) in enumerate(params):
        hops = [h]
        for _ in range(K_HOPS):
            hops.append(adj_norm @ hops[-1])
        h = jnp.concatenate(hops, axis=-1) @ w + b
        if i != last:
            h = jnp.maximum(h, 0.0)
    return h


def init_params(key, in_feats, n_hidden, n_classes, n_layers):
    """Deterministic parameter init mirroring nn.Linear((K+1)*f_in, f_out)."""
    dims = [(in_feats, n_hidden)]
    dims += [(n_hidden, n_hidden) for _ in range(n_layers - 1)]
    dims += [(n_hidden, n_classes)]
    params = []
    for (f_in, f_out) in dims:
        key, kw, kb = jax.random.split(key, 3)
        fan_in = (K_HOPS + 1) * f_in
        bound = 1.0 / jnp.sqrt(fan_in)
        w = jax.random.uniform(kw, (fan_in, f_out), jnp.float32, -bound, bound)
        b = jax.random.uniform(kb, (f_out,), jnp.float32, -bound, bound)
        params.append((w, b))
    return params


def build_graph(key, n_nodes):
    """Deterministic symmetric adjacency + symmetric degree normalization (DGL style)."""
    a = jax.random.bernoulli(key, 0.15, (n_nodes, n_nodes)).astype(jnp.float32)
    a = jnp.triu(a, 1)
    a = a + a.T                         # undirected, no self loops
    deg = jnp.clip(a.sum(axis=1), 1.0)  # clamp(min=1) like DGL
    dinv = deg ** -0.5
    return dinv[:, None] * a * dinv[None, :]


if __name__ == "__main__":
    N_NODES = 64
    IN_FEATS = 16
    N_HIDDEN = 32
    N_CLASSES = 8
    N_LAYERS = 2  # -> 3 TAGConv layers total

    root = jax.random.PRNGKey(0)
    k_graph, k_feat, k_param = jax.random.split(root, 3)

    adj_norm = build_graph(k_graph, N_NODES)
    features = jax.random.normal(k_feat, (N_NODES, IN_FEATS), jnp.float32)
    params = init_params(k_param, IN_FEATS, N_HIDDEN, N_CLASSES, N_LAYERS)

    out = jax.block_until_ready(tagcn_forward(adj_norm, features, params))
    ref = jax.block_until_ready(tagcn_reference(adj_norm, features, params))

    assert out.shape == (N_NODES, N_CLASSES), out.shape
    assert jnp.allclose(out, ref, atol=1e-4, rtol=1e-4), float(jnp.abs(out - ref).max())
    print("KERNEL_OK")
</pallas_src>

<mosaic_0001>
module attributes {stable_mosaic.version = 11 : i64} {
  func.func @tagcn_kernel(%arg0: memref<64x64xf32, #tpu.memory_space<vmem>>, %arg1: memref<64x128xf32, #tpu.memory_space<vmem>>, %arg2: memref<384x128xf32, #tpu.memory_space<vmem>>, %arg3: memref<384x128xf32, #tpu.memory_space<vmem>>, %arg4: memref<384x128xf32, #tpu.memory_space<vmem>>, %arg5: memref<1x128xf32, #tpu.memory_space<vmem>>, %arg6: memref<1x128xf32, #tpu.memory_space<vmem>>, %arg7: memref<1x128xf32, #tpu.memory_space<vmem>>, %arg8: memref<64x128xf32, #tpu.memory_space<vmem>>) attributes {dimension_semantics = [], scalar_prefetch = 0 : i64, scratch_operands = 0 : i64, tpu.core_type = #tpu.core_type<tc>} {
    %c0 = arith.constant 0 : index
    %c0_0 = arith.constant 0 : index
    %0 = vector.load %arg0[%c0, %c0_0] : memref<64x64xf32, #tpu.memory_space<vmem>>, vector<64x64xf32>
    %c0_1 = arith.constant 0 : index
    %c0_2 = arith.constant 0 : index
    %1 = vector.load %arg1[%c0_1, %c0_2] : memref<64x128xf32, #tpu.memory_space<vmem>>, vector<64x128xf32>
    %c0_3 = arith.constant 0 : index
    %c0_4 = arith.constant 0 : index
    %2 = vector.load %arg2[%c0_3, %c0_4] : memref<384x128xf32, #tpu.memory_space<vmem>>, vector<128x128xf32>
    %cst = arith.constant dense<0.000000e+00> : vector<64x128xf32>
    %3 = tpu.matmul %1, %2, %cst {dimension_numbers = #tpu.dot_dimension_numbers<[1], [0], [0], [1], [0, 0, 1, 1], [], []>} : vector<64x128xf32>, vector<128x128xf32>, vector<64x128xf32> -> vector<64x128xf32>
    %c0_5 = arith.constant 0 : index
    %c0_6 = arith.constant 0 : index
    %4 = vector.load %arg5[%c0_5, %c0_6] : memref<1x128xf32, #tpu.memory_space<vmem>>, vector<1x128xf32>
    %5 = vector.broadcast %4 : vector<1x128xf32> to vector<64x128xf32>
    %6 = arith.addf %3, %5 : vector<64x128xf32>
    %cst_7 = arith.constant dense<0.000000e+00> : vector<64x128xf32>
    %7 = tpu.matmul %0, %1, %cst_7 {dimension_numbers = #tpu.dot_dimension_numbers<[1], [0], [0], [1], [0, 0, 1, 1], [], []>} : vector<64x64xf32>, vector<64x128xf32>, vector<64x128xf32> -> vector<64x128xf32>
    %c128 = arith.constant 128 : index
    %c0_8 = arith.constant 0 : index
    %8 = vector.load %arg2[%c128, %c0_8] : memref<384x128xf32, #tpu.memory_space<vmem>>, vector<128x128xf32>
    %cst_9 = arith.constant dense<0.000000e+00> : vector<64x128xf32>
    %9 = tpu.matmul %7, %8, %cst_9 {dimension_numbers = #tpu.dot_dimension_numbers<[1], [0], [0], [1], [0, 0, 1, 1], [], []>} : vector<64x128xf32>, vector<128x128xf32>, vector<64x128xf32> -> vector<64x128xf32>
    %10 = arith.addf %6, %9 : vector<64x128xf32>
    %cst_10 = arith.constant dense<0.000000e+00> : vector<64x128xf32>
    %11 = tpu.matmul %0, %7, %cst_10 {dimension_numbers = #tpu.dot_dimension_numbers<[1], [0], [0], [1], [0, 0, 1, 1], [], []>} : vector<64x64xf32>, vector<64x128xf32>, vector<64x128xf32> -> vector<64x128xf32>
    %c256 = arith.constant 256 : index
    %c0_11 = arith.constant 0 : index
    %12 = vector.load %arg2[%c256, %c0_11] : memref<384x128xf32, #tpu.memory_space<vmem>>, vector<128x128xf32>
    %cst_12 = arith.constant dense<0.000000e+00> : vector<64x128xf32>
    %13 = tpu.matmul %11, %12, %cst_12 {dimension_numbers = #tpu.dot_dimension_numbers<[1], [0], [0], [1], [0, 0, 1, 1], [], []>} : vector<64x128xf32>, vector<128x128xf32>, vector<64x128xf32> -> vector<64x128xf32>
    %14 = arith.addf %10, %13 : vector<64x128xf32>
    %cst_13 = arith.constant 0.000000e+00 : f32
    %15 = vector.broadcast %cst_13 : f32 to vector<64x128xf32>
    %16 = arith.maximumf %14, %15 : vector<64x128xf32>
    %c0_14 = arith.constant 0 : index
    %c0_15 = arith.constant 0 : index
    %17 = vector.load %arg3[%c0_14, %c0_15] : memref<384x128xf32, #tpu.memory_space<vmem>>, vector<128x128xf32>
    %cst_16 = arith.constant dense<0.000000e+00> : vector<64x128xf32>
    %18 = tpu.matmul %16, %17, %cst_16 {dimension_numbers = #tpu.dot_dimension_numbers<[1], [0], [0], [1], [0, 0, 1, 1], [], []>} : vector<64x128xf32>, vector<128x128xf32>, vector<64x128xf32> -> vector<64x128xf32>
    %c0_17 = arith.constant 0 : index
    %c0_18 = arith.constant 0 : index
    %19 = vector.load %arg6[%c0_17, %c0_18] : memref<1x128xf32, #tpu.memory_space<vmem>>, vector<1x128xf32>
    %20 = vector.broadcast %19 : vector<1x128xf32> to vector<64x128xf32>
    %21 = arith.addf %18, %20 : vector<64x128xf32>
    %cst_19 = arith.constant dense<0.000000e+00> : vector<64x128xf32>
    %22 = tpu.matmul %0, %16, %cst_19 {dimension_numbers = #tpu.dot_dimension_numbers<[1], [0], [0], [1], [0, 0, 1, 1], [], []>} : vector<64x64xf32>, vector<64x128xf32>, vector<64x128xf32> -> vector<64x128xf32>
    %c128_20 = arith.constant 128 : index
    %c0_21 = arith.constant 0 : index
    %23 = vector.load %arg3[%c128_20, %c0_21] : memref<384x128xf32, #tpu.memory_space<vmem>>, vector<128x128xf32>
    %cst_22 = arith.constant dense<0.000000e+00> : vector<64x128xf32>
    %24 = tpu.matmul %22, %23, %cst_22 {dimension_numbers = #tpu.dot_dimension_numbers<[1], [0], [0], [1], [0, 0, 1, 1], [], []>} : vector<64x128xf32>, vector<128x128xf32>, vector<64x128xf32> -> vector<64x128xf32>
    %25 = arith.addf %21, %24 : vector<64x128xf32>
    %cst_23 = arith.constant dense<0.000000e+00> : vector<64x128xf32>
    %26 = tpu.matmul %0, %22, %cst_23 {dimension_numbers = #tpu.dot_dimension_numbers<[1], [0], [0], [1], [0, 0, 1, 1], [], []>} : vector<64x64xf32>, vector<64x128xf32>, vector<64x128xf32> -> vector<64x128xf32>
    %c256_24 = arith.constant 256 : index
    %c0_25 = arith.constant 0 : index
    %27 = vector.load %arg3[%c256_24, %c0_25] : memref<384x128xf32, #tpu.memory_space<vmem>>, vector<128x128xf32>
    %cst_26 = arith.constant dense<0.000000e+00> : vector<64x128xf32>
    %28 = tpu.matmul %26, %27, %cst_26 {dimension_numbers = #tpu.dot_dimension_numbers<[1], [0], [0], [1], [0, 0, 1, 1], [], []>} : vector<64x128xf32>, vector<128x128xf32>, vector<64x128xf32> -> vector<64x128xf32>
    %29 = arith.addf %25, %28 : vector<64x128xf32>
    %cst_27 = arith.constant 0.000000e+00 : f32
    %30 = vector.broadcast %cst_27 : f32 to vector<64x128xf32>
    %31 = arith.maximumf %29, %30 : vector<64x128xf32>
    %c0_28 = arith.constant 0 : index
    %c0_29 = arith.constant 0 : index
    %32 = vector.load %arg4[%c0_28, %c0_29] : memref<384x128xf32, #tpu.memory_space<vmem>>, vector<128x128xf32>
    %cst_30 = arith.constant dense<0.000000e+00> : vector<64x128xf32>
    %33 = tpu.matmul %31, %32, %cst_30 {dimension_numbers = #tpu.dot_dimension_numbers<[1], [0], [0], [1], [0, 0, 1, 1], [], []>} : vector<64x128xf32>, vector<128x128xf32>, vector<64x128xf32> -> vector<64x128xf32>
    %c0_31 = arith.constant 0 : index
    %c0_32 = arith.constant 0 : index
    %34 = vector.load %arg7[%c0_31, %c0_32] : memref<1x128xf32, #tpu.memory_space<vmem>>, vector<1x128xf32>
    %35 = vector.broadcast %34 : vector<1x128xf32> to vector<64x128xf32>
    %36 = arith.addf %33, %35 : vector<64x128xf32>
    %cst_33 = arith.constant dense<0.000000e+00> : vector<64x128xf32>
    %37 = tpu.matmul %0, %31, %cst_33 {dimension_numbers = #tpu.dot_dimension_numbers<[1], [0], [0], [1], [0, 0, 1, 1], [], []>} : vector<64x64xf32>, vector<64x128xf32>, vector<64x128xf32> -> vector<64x128xf32>
    %c128_34 = arith.constant 128 : index
    %c0_35 = arith.constant 0 : index
    %38 = vector.load %arg4[%c128_34, %c0_35] : memref<384x128xf32, #tpu.memory_space<vmem>>, vector<128x128xf32>
    %cst_36 = arith.constant dense<0.000000e+00> : vector<64x128xf32>
    %39 = tpu.matmul %37, %38, %cst_36 {dimension_numbers = #tpu.dot_dimension_numbers<[1], [0], [0], [1], [0, 0, 1, 1], [], []>} : vector<64x128xf32>, vector<128x128xf32>, vector<64x128xf32> -> vector<64x128xf32>
    %40 = arith.addf %36, %39 : vector<64x128xf32>
    %cst_37 = arith.constant dense<0.000000e+00> : vector<64x128xf32>
    %41 = tpu.matmul %0, %37, %cst_37 {dimension_numbers = #tpu.dot_dimension_numbers<[1], [0], [0], [1], [0, 0, 1, 1], [], []>} : vector<64x64xf32>, vector<64x128xf32>, vector<64x128xf32> -> vector<64x128xf32>
    %c256_38 = arith.constant 256 : index
    %c0_39 = arith.constant 0 : index
    %42 = vector.load %arg4[%c256_38, %c0_39] : memref<384x128xf32, #tpu.memory_space<vmem>>, vector<128x128xf32>
    %cst_40 = arith.constant dense<0.000000e+00> : vector<64x128xf32>
    %43 = tpu.matmul %41, %42, %cst_40 {dimension_numbers = #tpu.dot_dimension_numbers<[1], [0], [0], [1], [0, 0, 1, 1], [], []>} : vector<64x128xf32>, vector<128x128xf32>, vector<64x128xf32> -> vector<64x128xf32>
    %44 = arith.addf %40, %43 : vector<64x128xf32>
    %c0_41 = arith.constant 0 : index
    %c0_42 = arith.constant 0 : index
    %45 = vector.load %arg8[%c0_41, %c0_42] : memref<64x128xf32, #tpu.memory_space<vmem>>, vector<64x128xf32>
    tpu.vector_store %arg8[%c0_41, %c0_42], %44 {strides = array<i32>} : memref<64x128xf32, #tpu.memory_space<vmem>>, vector<64x128xf32>,
    return
  }
}

</mosaic_0001>

<bundles_post_ra>
// kernel: tpu_custom_call.1
= control target key start
LH: loop header
LB: loop body
LE: loop exit
PB: predicated region body
PF: predicated region fallthrough
CT: control target
= control target key end

     0   :  { %13 = vsyncpa [#allocation3], 0  ;;  %s1479_s0 = inlined_call_operand.hbm [shape: f32[64,64], index: 0, kind: input, shape index: {}]   ;;  %s1480_s1 = inlined_call_operand.hbm [shape: f32[64,128], index: 1, kind: input, shape index: {}]   ;;  %s1481_s2 = inlined_call_operand.hbm [shape: f32[384,128], index: 2, kind: input, shape index: {}]   ;;  %s1482_s3 = inlined_call_operand.hbm [shape: f32[384,128], index: 3, kind: input, shape index: {}]   ;;  %s1483_s4 = inlined_call_operand.hbm [shape: f32[384,128], index: 4, kind: input, shape index: {}]   ;;  %s1484_s5 = inlined_call_operand.vmem [shape: f32[1,128], index: 5, kind: input, shape index: {}]   ;;  %s1485_s6 = inlined_call_operand.vmem [shape: f32[1,128], index: 6, kind: input, shape index: {}]   ;;  %s1486_s7 = inlined_call_operand.vmem [shape: f32[1,128], index: 7, kind: input, shape index: {}]   ;;  %s1487_s8 = inlined_call_operand.hbm [shape: f32[64,128], index: 8, kind: output, shape index: {}]  }
   0x1   :  { %14 = vsyncpa [#allocation6], 0 }
   0x2   :  { %15 = vsyncpa [#allocation9], 0 }
   0x3   :  { %16 = vsyncpa [#allocation4], 0  ;;  %s34_s29 = sshll.u32 %s1480_s1, 4  ;;  %s1239_s30 = smov [#allocation5]   ;;  %s35_s29 = int_to_ptr.hbm [resolvable:$true] %s34_s29 }
   0x4   :  { %s36_s9 = sshll.u32 %s1239_s30, 4  ;;  %s60_s12 = sshll.u32 %s1482_s3, 4  ;;  %s37_s9 = int_to_ptr.vmem [resolvable:$true] %s36_s9  ;;  %s61_s12 = int_to_ptr.hbm [resolvable:$true] %s60_s12 }
   0x5   :  { %s1240_s13 = smov 128   ;;  %s1241_s14 = smov 8  }
   0x6   :  { %42 = dma.hbm_to_vmem [thread:$0]  %s35_s29, 1024, %s37_s9, [#allocation6], %s1240_s13, %s1240_s13, %s1241_s14  }
   0x7   :  { %s1242_s15 = smov [#allocation8]   ;;  %s21_s1 = sshll.u32 %s1479_s0, 4  ;;  %s22_s1 = int_to_ptr.hbm [resolvable:$true] %s21_s1 }
   0x8   :  { %s62_s16 = sshll.u32 %s1242_s15, 4  ;;  %s47_s20 = sshll.u32 %s1481_s2, 4  ;;  %s63_s16 = int_to_ptr.vmem [resolvable:$true] %s62_s16  ;;  %s48_s20 = int_to_ptr.hbm [resolvable:$true] %s47_s20 }
   0x9   :  { %68 = dma.hbm_to_vmem [thread:$0]  %s61_s12, 6144, %s63_s16, [#allocation9], %s1240_s13, %s1240_s13, %s1241_s14  }
   0xa   :  { %s1243_s21 = smov [#allocation2]   ;;  %s1244_s23 = smov [#allocation7]  }
   0xb   :  { %s23_s22 = sshll.u32 %s1243_s21, 4  ;;  %s49_s0 = sshll.u32 %s1244_s23, 4  ;;  %s24_s22 = int_to_ptr.vmem [resolvable:$true] %s23_s22  ;;  %s50_s0 = int_to_ptr.vmem [resolvable:$true] %s49_s0 }
   0xc   :  { %29 = dma.hbm_to_vmem [thread:$0]  %s22_s1, 1024, %s24_s22, [#allocation3], %s1240_s13, %s1240_s13, %s1241_s14  }
   0xd   :  { %s73_s26 = sshll.u32 %s1483_s4, 4  ;;  %s1245_s2 = smov [#allocation10]   ;;  %s74_s26 = int_to_ptr.hbm [resolvable:$true] %s73_s26 }
   0xe   :  { %55 = dma.hbm_to_vmem [thread:$0]  %s48_s20, 6144, %s50_s0, [#allocation6], %s1240_s13, %s1240_s13, %s1241_s14  }
   0xf   :  { %s75_s27 = sshll.u32 %s1245_s2, 4  ;;  %s76_s27 = int_to_ptr.vmem [resolvable:$true] %s75_s27 }
  0x10   :  { %81 = dma.hbm_to_vmem [thread:$0]  %s74_s26, 6144, %s76_s27, [#allocation9], %s1240_s13, %s1240_s13, %s1241_s14  }
  0x11   :  { %1231 = dma.done.wait [#allocation3], 1024  }
  0x12   :  { %1232 = vsyncadd [#allocation3], 4294966272 }
  0x13   :  { %1233 = dma.done.wait [#allocation6], 7168  }
  0x14   :  { %1234 = vsyncadd [#allocation6], 4294960128 }
  0x15   :  { %1235 = dma.done.wait [#allocation9], 12288  }
  0x16   :  { %1236 = vsyncadd [#allocation9], 4294955008  ;;  %v1322_v0 = vld [vmem:[#allocation5 + $0x38] sm:$0xff]  ;;  %v1324_v1 = vld [vmem:[#allocation5 + $0x30] sm:$0xff]  ;;  %vm185_vm0 = vcmask 523264   ;;  %s998_s12 = sshll.u32 %s1487_s8, 4  ;;  %s999_s12 = int_to_ptr.hbm [resolvable:$true] %s998_s12 }
  0x17   :  { %218 = vmatpush.msra.mxu1 %v1322_v0  ;;  %v1327_v2 = vld [vmem:[#allocation5 + $0x28] sm:$0xff]  ;;  %v1330_v3 = vld [vmem:[#allocation5 + $0x20] sm:$0xff]  ;;  %v1333_v4 = vld [vmem:[#allocation5 + $0x18] sm:$0xff] }
  0x18   :  { %v1336_v5 = vld [vmem:[#allocation5 + $0x10] sm:$0xff]  ;;  %v1339_v6 = vld [vmem:[#allocation5 + $0x8] sm:$0xff]  ;;  %v1342_v7 = vld [vmem:[#allocation5] sm:$0xff] }
  0x19   :  { %219 = vmatpush.msra.mxu1 %v1324_v1  ;;  %v1345_v8 = vld [vmem:[#allocation2] sm:$0xff]  ;;  %v1350_v9 = vld [vmem:[#allocation2 + $0x8] sm:$0xff]  ;;  %v1354_v10 = vld [vmem:[#allocation2 + $0x10] sm:$0xff] }
  0x1a   :  { %v1358_v11 = vld [vmem:[#allocation2 + $0x18] sm:$0xff]  ;;  %v265_v13 = vld [vmem:[#allocation7 + $0xf0] sm:$0xff]  ;;  %v264_v16 = vld [vmem:[#allocation7 + $0xe8] sm:$0xff] }
  0x1b   :  { %220 = vmatpush.msra.mxu1 %v1327_v2  ;;  %v266_v12 = vld [vmem:[#allocation7 + $0xf8] sm:$0xff]  ;;  %v138_v15 = vld [vmem:[#allocation7 + $0x70] sm:$0xff]  ;;  %v137_v17 = vld [vmem:[#allocation7 + $0x68] sm:$0xff] }
  0x1c   :  { %v139_v14 = vld [vmem:[#allocation7 + $0x78] sm:$0xff]  ;;  %267 = vmatpush.msra.mxu2 %v266_v12  ;;  %v263_v18 = vld [vmem:[#allocation7 + $0xe0] sm:$0xff]  ;;  %v261_v23 = vld [vmem:[#allocation7 + $0xd0] sm:$0xff] }
  0x1d   :  { %221 = vmatpush.msra.mxu1 %v1330_v3  ;;  %144 = vmatpush.msra.mxu0 %v139_v14  ;;  %v136_v19 = vld [vmem:[#allocation7 + $0x60] sm:$0xff]  ;;  %v262_v21 = vld [vmem:[#allocation7 + $0xd8] sm:$0xff]  ;;  %v134_v24 = vld [vmem:[#allocation7 + $0x50] sm:$0xff] }
  0x1e   :  { %268 = vmatpush.msra.mxu2 %v265_v13  ;;  %v1362_v20 = vld [vmem:[#allocation2 + $0x20] sm:$0xff]  ;;  %v135_v22 = vld [vmem:[#allocation7 + $0x58] sm:$0xff]  ;;  %v260_v25 = vld [vmem:[#allocation7 + $0xc8] sm:$0xff] }
  0x1f   :  { %222 = vmatpush.msra.mxu1 %v1333_v4  ;;  %145 = vmatpush.msra.mxu0 %v138_v15  ;;  %v133_v26 = vld [vmem:[#allocation7 + $0x48] sm:$0xff]  ;;  %v259_v27 = vld [vmem:[#allocation7 + $0xc0] sm:$0xff]  ;;  %v258_v30 = vld [vmem:[#allocation7 + $0xb8] sm:$0xff] }
  0x20   :  { %269 = vmatpush.msra.mxu2 %v264_v16  ;;  %v132_v28 = vld [vmem:[#allocation7 + $0x40] sm:$0xff]  ;;  %v1366_v29 = vld [vmem:[#allocation2 + $0x28] sm:$0xff]  ;;  %v131_v31 = vld [vmem:[#allocation7 + $0x38] sm:$0xff] }
  0x21   :  { %223 = vmatpush.msra.mxu1 %v1336_v5  ;;  %146 = vmatpush.msra.mxu0 %v137_v17  ;;  %v257_v32 = vld [vmem:[#allocation7 + $0xb0] sm:$0xff]  ;;  %v256_v34 = vld [vmem:[#allocation7 + $0xa8] sm:$0xff]  ;;  %v255_v36 = vld [vmem:[#allocation7 + $0xa0] sm:$0xff] }
  0x22   :  { %270 = vmatpush.msra.mxu2 %v263_v18  ;;  %v130_v33 = vld [vmem:[#allocation7 + $0x30] sm:$0xff]  ;;  %v129_v35 = vld [vmem:[#allocation7 + $0x28] sm:$0xff]  ;;  %v128_v37 = vld [vmem:[#allocation7 + $0x20] sm:$0xff] }
  0x23   :  { %224 = vmatpush.msra.mxu1 %v1339_v6  ;;  %147 = vmatpush.msra.mxu0 %v136_v19  ;;  %v1370_v38 = vld [vmem:[#allocation2 + $0x30] sm:$0xff]  ;;  %v254_v39 = vld [vmem:[#allocation7 + $0x98] sm:$0xff]  ;;  %v252_v43 = vld [vmem:[#allocation7 + $0x88] sm:$0xff] }
  0x24   :  { %271 = vmatpush.msra.mxu2 %v262_v21  ;;  %v127_v40 = vld [vmem:[#allocation7 + $0x18] sm:$0xff]  ;;  %v253_v41 = vld [vmem:[#allocation7 + $0x90] sm:$0xff]  ;;  %v251_v45 = vld [vmem:[#allocation7 + $0x80] sm:$0xff] }
  0x25   :  { %225 = vmatpush.msra.mxu1 %v1342_v7  ;;  %148 = vmatpush.msra.mxu0 %v135_v22  ;;  %v126_v42 = vld [vmem:[#allocation7 + $0x10] sm:$0xff]  ;;  %v1374_v44 = vld [vmem:[#allocation2 + $0x38] sm:$0xff]  ;;  %v125_v46 = vld [vmem:[#allocation7 + $0x8] sm:$0xff] }
  0x26   :  { %1013 = vmatmul.msk.f32.vlgmr.msra.gmra.mxu1 %vm185_vm0, %v1345_v8  ;;  %272 = vmatpush.msra.mxu2 %v261_v23  ;;  %v124_v47 = vld [vmem:[#allocation7] sm:$0xff]  ;;  %v372_v56 = vld [vmem:[#allocation7 + $0x178] sm:$0xff]  ;;  %v371_v57 = vld [vmem:[#allocation7 + $0x170] sm:$0xff] }
  0x27   :  { %149 = vmatpush.msra.mxu0 %v134_v24  ;;  %373 = vmatpush.msrb.mxu1 %v372_v56  ;;  %v370_v58 = vld [vmem:[#allocation7 + $0x168] sm:$0xff]  ;;  %v369_v59 = vld [vmem:[#allocation7 + $0x160] sm:$0xff]  ;;  %v368_v60 = vld [vmem:[#allocation7 + $0x158] sm:$0xff] }
  0x28   :  { %273 = vmatpush.msra.mxu2 %v260_v25  ;;  %v367_v61 = vld [vmem:[#allocation7 + $0x150] sm:$0xff]  ;;  %v366_v62 = vld [vmem:[#allocation7 + $0x148] sm:$0xff]  ;;  %v365_v63 = vld [vmem:[#allocation7 + $0x140] sm:$0xff] }
  0x29   :  { %150 = vmatpush.msra.mxu0 %v133_v26  ;;  %374 = vmatpush.msrb.mxu1 %v371_v57  ;;  %v445_v16 = vld [vmem:[#allocation8 + $0x78] sm:$0xff]  ;;  %v444_v17 = vld [vmem:[#allocation8 + $0x70] sm:$0xff]  ;;  %v443_v18 = vld [vmem:[#allocation8 + $0x68] sm:$0xff] }
  0x2a   :  { %274 = vmatpush.msra.mxu2 %v259_v27  ;;  %v442_v19 = vld [vmem:[#allocation8 + $0x60] sm:$0xff]  ;;  %v441_v21 = vld [vmem:[#allocation8 + $0x58] sm:$0xff]  ;;  %v440_v23 = vld [vmem:[#allocation8 + $0x50] sm:$0xff] }
  0x2b   :  { %151 = vmatpush.msra.mxu0 %v132_v28  ;;  %375 = vmatpush.msrb.mxu1 %v370_v58  ;;  %v439_v24 = vld [vmem:[#allocation8 + $0x48] sm:$0xff]  ;;  %v438_v25 = vld [vmem:[#allocation8 + $0x40] sm:$0xff]  ;;  %v437_v26 = vld [vmem:[#allocation8 + $0x38] sm:$0xff] }
  0x2c   :  { %275 = vmatpush.msra.mxu2 %v258_v30  ;;  %v436_v28 = vld [vmem:[#allocation8 + $0x30] sm:$0xff]  ;;  %v435_v30 = vld [vmem:[#allocation8 + $0x28] sm:$0xff] }
  0x2d   :  { %152 = vmatpush.msra.mxu0 %v131_v31  ;;  %376 = vmatpush.msrb.mxu1 %v369_v59  ;;  %v434_v31 = vld [vmem:[#allocation8 + $0x20] sm:$0xff] }
  0x2e   :  { %1014 = vmatmul.msk.f32.gmra.mxu1 %vm185_vm0, %v1350_v9  ;;  %276 = vmatpush.msra.mxu2 %v257_v32  ;;  %v433_v32 = vld [vmem:[#allocation8 + $0x18] sm:$0xff] }
  0x2f   :  { %153 = vmatpush.msra.mxu0 %v130_v33  ;;  %377 = vmatpush.msrb.mxu1 %v368_v60 }
  0x30   :  { %277 = vmatpush.msra.mxu2 %v256_v34 }
  0x31   :  { %154 = vmatpush.msra.mxu0 %v129_v35  ;;  %378 = vmatpush.msrb.mxu1 %v367_v61  ;;  %v432_v35 = vld [vmem:[#allocation8 + $0x10] sm:$0xff] }
  0x32   :  { %278 = vmatpush.msra.mxu2 %v255_v36  ;;  %v431_v36 = vld [vmem:[#allocation8 + $0x8] sm:$0xff] }
  0x33   :  { %155 = vmatpush.msra.mxu0 %v128_v37  ;;  %379 = vmatpush.msrb.mxu1 %v366_v62  ;;  %v430_v37 = vld [vmem:[#allocation8] sm:$0xff] }
  0x34   :  { %279 = vmatpush.msra.mxu2 %v254_v39 }
  0x35   :  { %156 = vmatpush.msra.mxu0 %v127_v40  ;;  %380 = vmatpush.msrb.mxu1 %v365_v63 }
  0x36   :  { %1015 = vmatmul.msk.f32.gmra.mxu1 %vm185_vm0, %v1354_v10  ;;  %280 = vmatpush.msra.mxu2 %v253_v41 }
  0x37   :  { %157 = vmatpush.msra.mxu0 %v126_v42  ;;  %v1077_v42 = vld [vmem:[%s1484_s5] ss:$0 sm:$0xff] }
  0x38   :  { %281 = vmatpush.msra.mxu2 %v252_v43 }
  0x39   :  { %158 = vmatpush.msra.mxu0 %v125_v46 }
  0x3a   :  { %282 = vmatpush.msra.mxu2 %v251_v45 }
  0x3b   :  { %159 = vmatpush.msra.mxu0 %v124_v47 }
  0x3c   :  { %160 = vmatmul.f32.vlgmr.msra.gmra.mxu0 %v1342_v7  ;;  %v357_v7 = vld [vmem:[#allocation7 + $0x100] sm:$0xff] }
  0x3e   :  { %1016 = vmatmul.msk.f32.gmra.mxu1 %vm185_vm0, %v1358_v11 }
  0x44   :  { %163 = vmatmul.f32.gmra.mxu0 %v1339_v6  ;;  %v358_v6 = vld [vmem:[#allocation7 + $0x108] sm:$0xff] }
  0x46   :  { %1017 = vmatmul.msk.f32.gmra.mxu1 %vm185_vm0, %v1362_v20 }
  0x4c   :  { %166 = vmatmul.f32.gmra.mxu0 %v1336_v5  ;;  %v359_v5 = vld [vmem:[#allocation7 + $0x110] sm:$0xff] }
  0x4e   :  { %1018 = vmatmul.msk.f32.gmra.mxu1 %vm185_vm0, %v1366_v29 }
  0x54   :  { %169 = vmatmul.f32.gmra.mxu0 %v1333_v4  ;;  %v360_v4 = vld [vmem:[#allocation7 + $0x118] sm:$0xff] }
  0x56   :  { %1019 = vmatmul.msk.f32.gmra.mxu1 %vm185_vm0, %v1370_v38 }
  0x5c   :  { %172 = vmatmul.f32.gmra.mxu0 %v1330_v3  ;;  %v361_v3 = vld [vmem:[#allocation7 + $0x120] sm:$0xff] }
  0x5e   :  { %1020 = vmatmul.msk.f32.gmra.mxu1 %vm185_vm0, %v1374_v44 }
  0x64   :  { %175 = vmatmul.f32.gmra.mxu0 %v1327_v2  ;;  %v362_v2 = vld [vmem:[#allocation7 + $0x128] sm:$0xff] }
  0x6c   :  { %178 = vmatmul.f32.gmra.mxu0 %v1324_v1  ;;  %v363_v1 = vld [vmem:[#allocation7 + $0x130] sm:$0xff] }
  0x74   :  { %181 = vmatmul.f32.gmra.mxu0 %v1322_v0  ;;  %v364_v0 = vld [vmem:[#allocation7 + $0x138] sm:$0xff] }
  0x75   :  { %381 = vmatpush.msrb.mxu1 %v364_v0 }
  0x77   :  { %382 = vmatpush.msrb.mxu1 %v363_v1 }
  0x79   :  { %383 = vmatpush.msrb.mxu1 %v362_v2 }
  0x7b   :  { %384 = vmatpush.msrb.mxu1 %v361_v3 }
  0x7d   :  { %385 = vmatpush.msrb.mxu1 %v360_v4 }
  0x7f   :  { %386 = vmatpush.msrb.mxu1 %v359_v5 }
  0x81   :  { %387 = vmatpush.msrb.mxu1 %v358_v6 }
  0x83   :  { %388 = vmatpush.msrb.mxu1 %v357_v7 }
  0xa3   :  { %v227_v48 = vpop.f32.mrf.mxu1 }
  0xa4   :  { %283 = vmatmul.f32.vlgmr.msra.gmra.mxu2 %v227_v48 }
  0xab   :  { %v230_v49 = vpop.f32.mrf.mxu1 }
  0xac   :  { %286 = vmatmul.f32.gmra.mxu2 %v230_v49 }
  0xb3   :  { %v233_v50 = vpop.f32.mrf.mxu1 }
  0xb4   :  { %289 = vmatmul.f32.gmra.mxu2 %v233_v50 }
  0xb9   :  { %v161_v39 = vpop.f32.mrf.mxu0 }
  0xba   :  { %v162_v45 = vadd.f32 %v1077_v42, %v161_v39 }
  0xbb   :  { %v236_v51 = vpop.f32.mrf.mxu1 }
  0xbc   :  { %292 = vmatmul.f32.gmra.mxu2 %v236_v51 }
  0xc1   :  { %v164_v41 = vpop.f32.mrf.mxu0 }
  0xc3   :  { %v239_v52 = vpop.f32.mrf.mxu1 }
  0xc4   :  { %295 = vmatmul.f32.gmra.mxu2 %v239_v52 }
  0xc9   :  { %v167_v46 = vpop.f32.mrf.mxu0 }
  0xca   :  { %v168_v57 = vadd.f32 %v1077_v42, %v167_v46  ;;  %v542_v46 = vld [vmem:[#allocation8 + $0xd0] sm:$0xff] }
  0xcb   :  { %v242_v53 = vpop.f32.mrf.mxu1 }
  0xcc   :  { %298 = vmatmul.f32.gmra.mxu2 %v242_v53 }
  0xd3   :  { %v245_v54 = vpop.f32.mrf.mxu1 }
  0xd4   :  { %301 = vmatmul.f32.gmra.mxu2 %v245_v54 }
  0xdb   :  { %v248_v55 = vpop.f32.mrf.mxu1 }
  0xdc   :  { %304 = vmatmul.f32.gmra.mxu2 %v248_v55  ;;  %324 = vmatpush.msra.mxu3 %v248_v55 }
  0xde   :  { %325 = vmatpush.msra.mxu3 %v245_v54  ;;  %v170_v54 = vpop.f32.mrf.mxu0 }
  0xdf   :  { %v171_v0 = vadd.f32 %v1077_v42, %v170_v54  ;;  %v534_v54 = vld [vmem:[#allocation8 + $0x90] sm:$0xff] }
  0xe0   :  { %326 = vmatpush.msra.mxu3 %v242_v53 }
  0xe2   :  { %327 = vmatpush.msra.mxu3 %v239_v52 }
  0xe4   :  { %328 = vmatpush.msra.mxu3 %v236_v51  ;;  %v165_v51 = vadd.f32 %v1077_v42, %v164_v41  ;;  %v546_v41 = vld [vmem:[#allocation8 + $0xf0] sm:$0xff] }
  0xe6   :  { %329 = vmatpush.msra.mxu3 %v233_v50  ;;  %v173_v63 = vpop.f32.mrf.mxu0 }
  0xe7   :  { %v174_v6 = vadd.f32 %v1077_v42, %v173_v63 }
  0xe8   :  { %330 = vmatpush.msra.mxu3 %v230_v49 }
  0xea   :  { %331 = vmatpush.msra.mxu3 %v227_v48 }
  0xeb   :  { %1021 = vmatmul.msk.f32.vlgmr.msra.gmra.mxu3 %vm185_vm0, %v1345_v8 }
  0xec   :  { %450 = vmatpush.msrb.mxu3 %v445_v16 }
  0xee   :  { %451 = vmatpush.msrb.mxu3 %v444_v17 }
  0xf0   :  { %452 = vmatpush.msrb.mxu3 %v443_v18 }
  0xf2   :  { %453 = vmatpush.msrb.mxu3 %v442_v19 }
  0xf3   :  { %1022 = vmatmul.msk.f32.gmra.mxu3 %vm185_vm0, %v1350_v9 }
  0xf4   :  { %454 = vmatpush.msrb.mxu3 %v441_v21 }
  0xf6   :  { %455 = vmatpush.msrb.mxu3 %v440_v23 }
  0xf8   :  { %456 = vmatpush.msrb.mxu3 %v439_v24 }
  0xfa   :  { %457 = vmatpush.msrb.mxu3 %v438_v25 }
  0xfb   :  { %1023 = vmatmul.msk.f32.gmra.mxu3 %vm185_vm0, %v1354_v10 }
  0xfc   :  { %458 = vmatpush.msrb.mxu3 %v437_v26 }
  0xfe   :  { %459 = vmatpush.msrb.mxu3 %v436_v28 }
 0x100   :  { %460 = vmatpush.msrb.mxu3 %v435_v30 }
 0x102   :  { %461 = vmatpush.msrb.mxu3 %v434_v31 }
 0x103   :  { %1024 = vmatmul.msk.f32.gmra.mxu3 %vm185_vm0, %v1358_v11 }
 0x104   :  { %462 = vmatpush.msrb.mxu3 %v433_v32 }
 0x106   :  { %463 = vmatpush.msrb.mxu3 %v432_v35 }
 0x108   :  { %464 = vmatpush.msrb.mxu3 %v431_v36 }
 0x10a   :  { %465 = vmatpush.msrb.mxu3 %v430_v37 }
 0x10b   :  { %1025 = vmatmul.msk.f32.gmra.mxu3 %vm185_vm0, %v1362_v20 }
 0x113   :  { %1026 = vmatmul.msk.f32.gmra.mxu3 %vm185_vm0, %v1366_v29 }
 0x11b   :  { %1027 = vmatmul.msk.f32.gmra.mxu3 %vm185_vm0, %v1370_v38 }
 0x123   :  { %1028 = vmatmul.msk.f32.gmra.mxu3 %vm185_vm0, %v1374_v44 }
 0x127   :  { %v284_v40 = vpop.f32.mrf.mxu2 }
 0x128   :  { %v308_v47 = vadd.f32 %v284_v40, %v162_v45  ;;  %v547_v40 = vld [vmem:[#allocation8 + $0xf8] sm:$0xff] }
 0x129   :  { %v543_v45 = vld [vmem:[#allocation8 + $0xd8] sm:$0xff] }
 0x12f   :  { %v287_v43 = vpop.f32.mrf.mxu2 }
 0x130   :  { %v309_v53 = vadd.f32 %v287_v43, %v165_v51  ;;  %v544_v43 = vld [vmem:[#allocation8 + $0xe0] sm:$0xff]  ;;  %v537_v51 = vld [vmem:[#allocation8 + $0xa8] sm:$0xff] }
 0x137   :  { %v290_v50 = vpop.f32.mrf.mxu2 }
 0x138   :  { %v310_v60 = vadd.f32 %v290_v50, %v168_v57  ;;  %v538_v50 = vld [vmem:[#allocation8 + $0xb0] sm:$0xff] }
 0x13f   :  { %v293_v59 = vpop.f32.mrf.mxu2 }
 0x140   :  { %v311_v3 = vadd.f32 %v293_v59, %v171_v0 }
 0x147   :  { %v296_v2 = vpop.f32.mrf.mxu2 }
 0x16e   :  { %v333_v12 = vpop.f32.mrf.mxu3 }
 0x16f   :  { %389 = vmatmul.f32.vlgmr.msrb.gmra.mxu1 %v333_v12  ;;  %v176_v12 = vpop.f32.mrf.mxu0 }
 0x170   :  { %v177_v17 = vadd.f32 %v1077_v42, %v176_v12  ;;  %v646_v12 = vld [vmem:[#allocation8 + $0x140] sm:$0xff] }
 0x176   :  { %v336_v13 = vpop.f32.mrf.mxu3 }
 0x177   :  { %392 = vmatmul.f32.gmra.mxu1 %v336_v13  ;;  %v312_v13 = vadd.f32 %v296_v2, %v174_v6  ;;  %v179_v19 = vpop.f32.mrf.mxu0  ;;  %v652_v2 = vld [vmem:[#allocation8 + $0x170] sm:$0xff] }
 0x178   :  { %v180_v25 = vadd.f32 %v1077_v42, %v179_v19  ;;  %v648_v6 = vld [vmem:[#allocation8 + $0x150] sm:$0xff]  ;;  %v639_v19 = vld [vmem:[#allocation8 + $0x108] sm:$0xff] }
 0x17e   :  { %v339_v14 = vpop.f32.mrf.mxu3 }
 0x17f   :  { %395 = vmatmul.f32.gmra.mxu1 %v339_v14  ;;  %v299_v14 = vpop.f32.mrf.mxu2  ;;  %v182_v28 = vpop.f32.mrf.mxu0 }
 0x180   :  { %v313_v21 = vadd.f32 %v299_v14, %v177_v17  ;;  %v183_v32 = vadd.f32 %v1077_v42, %v182_v28  ;;  %v545_v42 = vld [vmem:[#allocation8 + $0xe8] sm:$0xff]  ;;  %v644_v14 = vld [vmem:[#allocation8 + $0x130] sm:$0xff]  ;;  %v641_v17 = vld [vmem:[#allocation8 + $0x118] sm:$0xff] }
 0x181   :  { %v724_v28 = vld [vmem:[#allocation10 + $0x68] sm:$0xff] }
 0x186   :  { %v342_v15 = vpop.f32.mrf.mxu3 }
 0x187   :  { %398 = vmatmul.f32.gmra.mxu1 %v342_v15  ;;  %v302_v24 = vpop.f32.mrf.mxu2 }
 0x18e   :  { %v345_v22 = vpop.f32.mrf.mxu3 }
 0x18f   :  { %401 = vmatmul.f32.gmra.mxu1 %v345_v22 }
 0x196   :  { %v348_v27 = vpop.f32.mrf.mxu3 }
 0x197   :  { %404 = vmatmul.f32.gmra.mxu1 %v348_v27  ;;  %v314_v27 = vadd.f32 %v302_v24, %v180_v25 }
 0x19e   :  { %v351_v33 = vpop.f32.mrf.mxu3 }
 0x19f   :  { %407 = vmatmul.f32.gmra.mxu1 %v351_v33 }
 0x1a6   :  { %v354_v34 = vpop.f32.mrf.mxu3 }
 0x1a7   :  { %410 = vmatmul.f32.gmra.mxu1 %v354_v34  ;;  %v305_v34 = vpop.f32.mrf.mxu2 }
 0x1a8   :  { %v315_v35 = vadd.f32 %v305_v34, %v183_v32  ;;  %v720_v34 = vld [vmem:[#allocation10 + $0x48] sm:$0xff] }
 0x1ec   :  { %v390_v48 = vpop.f32.mrf.mxu1 }
 0x1ed   :  { %v414_v49 = vadd.f32 %v390_v48, %v308_v47  ;;  %v541_v47 = vld [vmem:[#allocation8 + $0xc8] sm:$0xff]  ;;  %v540_v48 = vld [vmem:[#allocation8 + $0xc0] sm:$0xff] }
 0x1ef   :  { %v1405_v52 = vmax.f32 %v414_v49, 0.0  ;;  %v539_v49 = vld [vmem:[#allocation8 + $0xb8] sm:$0xff] }
 0x1f1   :  { %466 = vmatmul.f32.vlgmr.msrb.gmra.mxu3 %v1405_v52 }
 0x1f4   :  { %v393_v55 = vpop.f32.mrf.mxu1 }
 0x1f5   :  { %v415_v56 = vadd.f32 %v393_v55, %v309_v53  ;;  %v535_v53 = vld [vmem:[#allocation8 + $0x98] sm:$0xff]  ;;  %v533_v55 = vld [vmem:[#allocation8 + $0x88] sm:$0xff] }
 0x1f7   :  { %v423_v58 = vmax.f32 %v415_v56, 0.0  ;;  %v532_v56 = vld [vmem:[#allocation8 + $0x80] sm:$0xff] }
 0x1f9   :  { %469 = vmatmul.f32.gmra.mxu3 %v423_v58 }
 0x1fc   :  { %v396_v61 = vpop.f32.mrf.mxu1 }
 0x1fd   :  { %v416_v62 = vadd.f32 %v396_v61, %v310_v60 }
 0x1ff   :  { %v424_v1 = vmax.f32 %v416_v62, 0.0 }
 0x201   :  { %472 = vmatmul.f32.gmra.mxu3 %v424_v1 }
 0x204   :  { %v399_v4 = vpop.f32.mrf.mxu1 }
 0x205   :  { %v417_v5 = vadd.f32 %v399_v4, %v311_v3  ;;  %v651_v3 = vld [vmem:[#allocation8 + $0x168] sm:$0xff]  ;;  %v650_v4 = vld [vmem:[#allocation8 + $0x160] sm:$0xff] }
 0x207   :  { %v425_v7 = vmax.f32 %v417_v5, 0.0  ;;  %v649_v5 = vld [vmem:[#allocation8 + $0x158] sm:$0xff] }
 0x209   :  { %475 = vmatmul.f32.gmra.mxu3 %v425_v7 }
 0x20c   :  { %v402_v15 = vpop.f32.mrf.mxu1 }
 0x20d   :  { %v418_v16 = vadd.f32 %v402_v15, %v312_v13  ;;  %v645_v13 = vld [vmem:[#allocation8 + $0x138] sm:$0xff]  ;;  %v643_v15 = vld [vmem:[#allocation8 + $0x128] sm:$0xff] }
 0x20f   :  { %v426_v18 = vmax.f32 %v418_v16, 0.0  ;;  %v642_v16 = vld [vmem:[#allocation8 + $0x120] sm:$0xff] }
 0x211   :  { %478 = vmatmul.f32.gmra.mxu3 %v426_v18 }
 0x214   :  { %v405_v22 = vpop.f32.mrf.mxu1 }
 0x215   :  { %v419_v23 = vadd.f32 %v405_v22, %v313_v21  ;;  %v638_v21 = vld [vmem:[#allocation8 + $0x100] sm:$0xff] }
 0x217   :  { %v427_v26 = vmax.f32 %v419_v23, 0.0 }
 0x219   :  { %481 = vmatmul.f32.gmra.mxu3 %v427_v26 }
 0x21c   :  { %v408_v30 = vpop.f32.mrf.mxu1 }
 0x21d   :  { %v420_v31 = vadd.f32 %v408_v30, %v314_v27  ;;  %v725_v27 = vld [vmem:[#allocation10 + $0x70] sm:$0xff]  ;;  %v723_v30 = vld [vmem:[#allocation10 + $0x60] sm:$0xff] }
 0x21f   :  { %v428_v33 = vmax.f32 %v420_v31, 0.0  ;;  %v722_v31 = vld [vmem:[#allocation10 + $0x58] sm:$0xff] }
 0x221   :  { %484 = vmatmul.f32.gmra.mxu3 %v428_v33 }
 0x224   :  { %v411_v36 = vpop.f32.mrf.mxu1 }
 0x225   :  { %v421_v37 = vadd.f32 %v411_v36, %v315_v35  ;;  %v719_v35 = vld [vmem:[#allocation10 + $0x40] sm:$0xff]  ;;  %v718_v36 = vld [vmem:[#allocation10 + $0x38] sm:$0xff] }
 0x227   :  { %v429_v39 = vmax.f32 %v421_v37, 0.0 }
 0x229   :  { %487 = vmatmul.f32.gmra.mxu3 %v429_v39  ;;  %499 = vmatpush.msrb.mxu0 %v429_v39 }
 0x22a   :  { %1061 = vmatpush.msrb.mxu2 %v429_v39  ;;  %v717_v39 = vld [vmem:[#allocation10 + $0x30] sm:$0xff] }
 0x22b   :  { %500 = vmatpush.msrb.mxu0 %v428_v33 }
 0x22c   :  { %1062 = vmatpush.msrb.mxu2 %v428_v33  ;;  %v721_v33 = vld [vmem:[#allocation10 + $0x50] sm:$0xff] }
 0x22d   :  { %501 = vmatpush.msrb.mxu0 %v427_v26 }
 0x22e   :  { %1063 = vmatpush.msrb.mxu2 %v427_v26  ;;  %v726_v26 = vld [vmem:[#allocation10 + $0x78] sm:$0xff] }
 0x22f   :  { %502 = vmatpush.msrb.mxu0 %v426_v18 }
 0x230   :  { %1064 = vmatpush.msrb.mxu2 %v426_v18  ;;  %v640_v18 = vld [vmem:[#allocation8 + $0x110] sm:$0xff] }
 0x231   :  { %503 = vmatpush.msrb.mxu0 %v425_v7 }
 0x232   :  { %1065 = vmatpush.msrb.mxu2 %v425_v7  ;;  %v647_v7 = vld [vmem:[#allocation8 + $0x148] sm:$0xff] }
 0x233   :  { %504 = vmatpush.msrb.mxu0 %v424_v1 }
 0x234   :  { %1066 = vmatpush.msrb.mxu2 %v424_v1  ;;  %v653_v1 = vld [vmem:[#allocation8 + $0x178] sm:$0xff] }
 0x235   :  { %505 = vmatpush.msrb.mxu0 %v423_v58  ;;  %654 = vmatpush.msra.mxu3 %v653_v1 }
 0x236   :  { %1067 = vmatpush.msrb.mxu2 %v423_v58 }
 0x237   :  { %506 = vmatpush.msrb.mxu0 %v1405_v52  ;;  %655 = vmatpush.msra.mxu3 %v652_v2 }
 0x238   :  { %1068 = vmatpush.msrb.mxu2 %v1405_v52  ;;  %1029 = vmatmul.msk.f32.vlgmr.msrb.gmra.mxu0 %vm185_vm0, %v1345_v8  ;;  %v536_v52 = vld [vmem:[#allocation8 + $0xa0] sm:$0xff] }
 0x239   :  { %1033 = vmatmul.msk.f32.vlgmr.msrb.gmra.mxu2 %vm185_vm0, %v1362_v20  ;;  %656 = vmatpush.msra.mxu3 %v651_v3 }
 0x23a   :  { %548 = vmatpush.msra.mxu2 %v547_v40  ;;  %731 = vmatpush.msra.mxu0 %v726_v26  ;;  %v716_v40 = vld [vmem:[#allocation10 + $0x28] sm:$0xff] }
 0x23b   :  { %657 = vmatpush.msra.mxu3 %v650_v4 }
 0x23c   :  { %549 = vmatpush.msra.mxu2 %v546_v41  ;;  %732 = vmatpush.msra.mxu0 %v725_v27  ;;  %v715_v41 = vld [vmem:[#allocation10 + $0x20] sm:$0xff] }
 0x23d   :  { %658 = vmatpush.msra.mxu3 %v649_v5 }
 0x23e   :  { %550 = vmatpush.msra.mxu2 %v545_v42  ;;  %733 = vmatpush.msra.mxu0 %v724_v28  ;;  %v714_v42 = vld [vmem:[#allocation10 + $0x18] sm:$0xff] }
 0x23f   :  { %659 = vmatpush.msra.mxu3 %v648_v6 }
 0x240   :  { %1030 = vmatmul.msk.f32.gmra.mxu0 %vm185_vm0, %v1350_v9  ;;  %551 = vmatpush.msra.mxu2 %v544_v43 }
 0x241   :  { %1034 = vmatmul.msk.f32.gmra.mxu2 %vm185_vm0, %v1366_v29  ;;  %660 = vmatpush.msra.mxu3 %v647_v7 }
 0x242   :  { %552 = vmatpush.msra.mxu2 %v543_v45  ;;  %734 = vmatpush.msra.mxu0 %v723_v30 }
 0x243   :  { %661 = vmatpush.msra.mxu3 %v646_v12 }
 0x244   :  { %553 = vmatpush.msra.mxu2 %v542_v46  ;;  %735 = vmatpush.msra.mxu0 %v722_v31 }
 0x245   :  { %662 = vmatpush.msra.mxu3 %v645_v13 }
 0x246   :  { %554 = vmatpush.msra.mxu2 %v541_v47  ;;  %736 = vmatpush.msra.mxu0 %v721_v33 }
 0x247   :  { %663 = vmatpush.msra.mxu3 %v644_v14 }
 0x248   :  { %1031 = vmatmul.msk.f32.gmra.mxu0 %vm185_vm0, %v1354_v10  ;;  %555 = vmatpush.msra.mxu2 %v540_v48 }
 0x249   :  { %1035 = vmatmul.msk.f32.gmra.mxu2 %vm185_vm0, %v1370_v38  ;;  %664 = vmatpush.msra.mxu3 %v643_v15 }
 0x24a   :  { %556 = vmatpush.msra.mxu2 %v539_v49  ;;  %737 = vmatpush.msra.mxu0 %v720_v34 }
 0x24b   :  { %665 = vmatpush.msra.mxu3 %v642_v16 }
 0x24c   :  { %557 = vmatpush.msra.mxu2 %v538_v50  ;;  %738 = vmatpush.msra.mxu0 %v719_v35 }
 0x24d   :  { %666 = vmatpush.msra.mxu3 %v641_v17 }
 0x24e   :  { %558 = vmatpush.msra.mxu2 %v537_v51  ;;  %739 = vmatpush.msra.mxu0 %v718_v36  ;;  %v713_v51 = vld [vmem:[#allocation10 + $0x10] sm:$0xff] }
 0x24f   :  { %667 = vmatpush.msra.mxu3 %v640_v18 }
 0x250   :  { %1032 = vmatmul.msk.f32.gmra.mxu0 %vm185_vm0, %v1358_v11  ;;  %559 = vmatpush.msra.mxu2 %v536_v52  ;;  %v712_v52 = vld [vmem:[#allocation10 + $0x8] sm:$0xff] }
 0x251   :  { %1036 = vmatmul.msk.f32.gmra.mxu2 %vm185_vm0, %v1374_v44  ;;  %668 = vmatpush.msra.mxu3 %v639_v19 }
 0x252   :  { %560 = vmatpush.msra.mxu2 %v535_v53  ;;  %740 = vmatpush.msra.mxu0 %v717_v39  ;;  %v711_v53 = vld [vmem:[#allocation10] sm:$0xff] }
 0x253   :  { %669 = vmatpush.msra.mxu3 %v638_v21 }
 0x254   :  { %561 = vmatpush.msra.mxu2 %v534_v54  ;;  %741 = vmatpush.msra.mxu0 %v716_v40 }
 0x256   :  { %562 = vmatpush.msra.mxu2 %v533_v55  ;;  %742 = vmatpush.msra.mxu0 %v715_v41 }
 0x258   :  { %563 = vmatpush.msra.mxu2 %v532_v56  ;;  %743 = vmatpush.msra.mxu0 %v714_v42 }
 0x25a   :  { %744 = vmatpush.msra.mxu0 %v713_v51  ;;  %v822_v51 = vld [vmem:[#allocation10 + $0xc8] sm:$0xff] }
 0x25c   :  { %745 = vmatpush.msra.mxu0 %v712_v52  ;;  %v820_v52 = vld [vmem:[#allocation10 + $0xb8] sm:$0xff] }
 0x25e   :  { %746 = vmatpush.msra.mxu0 %v711_v53  ;;  %v818_v53 = vld [vmem:[#allocation10 + $0xa8] sm:$0xff] }
 0x274   :  { %v467_v45 = vpop.f32.mrf.mxu3 }
 0x27c   :  { %v470_v47 = vpop.f32.mrf.mxu3 }
 0x284   :  { %v473_v48 = vpop.f32.mrf.mxu3 }
 0x28c   :  { %v476_v49 = vpop.f32.mrf.mxu3 }
 0x294   :  { %v479_v50 = vpop.f32.mrf.mxu3 }
 0x29c   :  { %v482_v54 = vpop.f32.mrf.mxu3 }
 0x2a4   :  { %v485_v55 = vpop.f32.mrf.mxu3 }
 0x2b5   :  { %v508_v57 = vpop.f32.mrf.mxu0 }
 0x2b6   :  { %564 = vmatmul.f32.vlgmr.msra.gmra.mxu2 %v508_v57 }
 0x2bc   :  { %v520_v58 = vpop.f32.mrf.mxu2 }
 0x2bd   :  { %v511_v59 = vpop.f32.mrf.mxu0 }
 0x2be   :  { %567 = vmatmul.f32.gmra.mxu2 %v511_v59 }
 0x2c4   :  { %v523_v60 = vpop.f32.mrf.mxu2 }
 0x2c5   :  { %v514_v61 = vpop.f32.mrf.mxu0 }
 0x2c6   :  { %570 = vmatmul.f32.gmra.mxu2 %v514_v61 }
 0x2cc   :  { %v526_v62 = vpop.f32.mrf.mxu2 }
 0x2cd   :  { %v517_v63 = vpop.f32.mrf.mxu0 }
 0x2ce   :  { %573 = vmatmul.f32.gmra.mxu2 %v517_v63 }
 0x2d4   :  { %v529_v0 = vpop.f32.mrf.mxu2 }
 0x2d5   :  { %605 = vmatpush.msra.mxu1 %v529_v0 }
 0x2d6   :  { %576 = vmatmul.f32.gmra.mxu2 %v520_v58 }
 0x2d7   :  { %606 = vmatpush.msra.mxu1 %v526_v62 }
 0x2d9   :  { %607 = vmatpush.msra.mxu1 %v523_v60 }
 0x2db   :  { %608 = vmatpush.msra.mxu1 %v520_v58 }
 0x2dd   :  { %609 = vmatpush.msra.mxu1 %v517_v63 }
 0x2de   :  { %579 = vmatmul.f32.gmra.mxu2 %v523_v60 }
 0x2df   :  { %610 = vmatpush.msra.mxu1 %v514_v61 }
 0x2e1   :  { %611 = vmatpush.msra.mxu1 %v511_v59  ;;  %v1078_v59 = vld [vmem:[%s1485_s6] ss:$0 sm:$0xff] }
 0x2e2   :  { %v468_v60 = vadd.f32 %v1078_v59, %v467_v45  ;;  %v471_v2 = vadd.f32 %v1078_v59, %v470_v47  ;;  %v474_v12 = vadd.f32 %v1078_v59, %v473_v48  ;;  %v477_v17 = vadd.f32 %v1078_v59, %v476_v49 }
 0x2e3   :  { %612 = vmatpush.msra.mxu1 %v508_v57  ;;  %v488_v57 = vpop.f32.mrf.mxu3  ;;  %v483_v31 = vadd.f32 %v1078_v59, %v482_v54  ;;  %v817_v54 = vld [vmem:[#allocation10 + $0xa0] sm:$0xff] }
 0x2e4   :  { %1037 = vmatmul.msk.f32.vlgmr.msra.gmra.mxu1 %vm185_vm0, %v1345_v8  ;;  %v489_v45 = vadd.f32 %v1078_v59, %v488_v57  ;;  %v814_v57 = vld [vmem:[#allocation10 + $0x88] sm:$0xff] }
 0x2e6   :  { %582 = vmatmul.f32.gmra.mxu2 %v526_v62 }
 0x2ec   :  { %1038 = vmatmul.msk.f32.gmra.mxu1 %vm185_vm0, %v1350_v9 }
 0x2ee   :  { %585 = vmatmul.f32.gmra.mxu2 %v529_v0 }
 0x2f4   :  { %1039 = vmatmul.msk.f32.gmra.mxu1 %vm185_vm0, %v1354_v10 }
 0x2fc   :  { %1040 = vmatmul.msk.f32.gmra.mxu1 %vm185_vm0, %v1358_v11 }
 0x304   :  { %1041 = vmatmul.msk.f32.gmra.mxu1 %vm185_vm0, %v1362_v20 }
 0x30c   :  { %1042 = vmatmul.msk.f32.gmra.mxu1 %vm185_vm0, %v1366_v29 }
 0x314   :  { %1043 = vmatmul.msk.f32.gmra.mxu1 %vm185_vm0, %v1370_v38 }
 0x31c   :  { %1044 = vmatmul.msk.f32.gmra.mxu1 %vm185_vm0, %v1374_v44 }
 0x339   :  { %v565_v56 = vpop.f32.mrf.mxu2 }
 0x33a   :  { %v589_v61 = vadd.f32 %v565_v56, %v468_v60  ;;  %v815_v56 = vld [vmem:[#allocation10 + $0x90] sm:$0xff] }
 0x341   :  { %v568_v58 = vpop.f32.mrf.mxu2 }
 0x342   :  { %v590_v3 = vadd.f32 %v568_v58, %v471_v2  ;;  %v813_v58 = vld [vmem:[#allocation10 + $0x80] sm:$0xff] }
 0x349   :  { %v571_v0 = vpop.f32.mrf.mxu2 }
 0x34a   :  { %v591_v13 = vadd.f32 %v571_v0, %v474_v12  ;;  %v1085_v12 = vld [vmem:[#allocation2 + $0x28] sm:$0xff] }
 0x351   :  { %v574_v7 = vpop.f32.mrf.mxu2 }
 0x352   :  { %v592_v19 = vadd.f32 %v574_v7, %v477_v17  ;;  %v1084_v7 = vld [vmem:[#allocation2 + $0x20] sm:$0xff] }
 0x353   :  { %v931_v17 = vld [vmem:[#allocation10 + $0x160] sm:$0xff] }
 0x359   :  { %v577_v18 = vpop.f32.mrf.mxu2 }
 0x361   :  { %v614_v22 = vpop.f32.mrf.mxu1  ;;  %v580_v26 = vpop.f32.mrf.mxu2 }
 0x362   :  { %670 = vmatmul.f32.vlgmr.msra.gmra.mxu3 %v614_v22 }
 0x369   :  { %v617_v23 = vpop.f32.mrf.mxu1  ;;  %v583_v35 = vpop.f32.mrf.mxu2 }
 0x36a   :  { %673 = vmatmul.f32.gmra.mxu3 %v617_v23 }
 0x371   :  { %v620_v24 = vpop.f32.mrf.mxu1 }
 0x372   :  { %676 = vmatmul.f32.gmra.mxu3 %v620_v24  ;;  %v480_v24 = vadd.f32 %v1078_v59, %v479_v50  ;;  %v825_v50 = vld [vmem:[#allocation10 + $0xe0] sm:$0xff] }
 0x379   :  { %v623_v25 = vpop.f32.mrf.mxu1 }
 0x37a   :  { %679 = vmatmul.f32.gmra.mxu3 %v623_v25  ;;  %v593_v25 = vadd.f32 %v577_v18, %v480_v24  ;;  %v930_v18 = vld [vmem:[#allocation10 + $0x158] sm:$0xff]  ;;  %v925_v24 = vld [vmem:[#allocation10 + $0x130] sm:$0xff] }
 0x381   :  { %v626_v32 = vpop.f32.mrf.mxu1 }
 0x382   :  { %682 = vmatmul.f32.gmra.mxu3 %v626_v32  ;;  %v594_v32 = vadd.f32 %v580_v26, %v483_v31  ;;  %v922_v26 = vld [vmem:[#allocation10 + $0x118] sm:$0xff] }
 0x389   :  { %v629_v37 = vpop.f32.mrf.mxu1 }
 0x38a   :  { %685 = vmatmul.f32.gmra.mxu3 %v629_v37  ;;  %v486_v37 = vadd.f32 %v1078_v59, %v485_v55  ;;  %v816_v55 = vld [vmem:[#allocation10 + $0x98] sm:$0xff] }
 0x38c   :  { %v595_v39 = vadd.f32 %v583_v35, %v486_v37 }
 0x391   :  { %v632_v43 = vpop.f32.mrf.mxu1 }
 0x392   :  { %688 = vmatmul.f32.gmra.mxu3 %v632_v43  ;;  %v586_v43 = vpop.f32.mrf.mxu2 }
 0x399   :  { %v635_v46 = vpop.f32.mrf.mxu1 }
 0x39a   :  { %691 = vmatmul.f32.gmra.mxu3 %v635_v46  ;;  %v596_v46 = vadd.f32 %v586_v43, %v489_v45 }
 0x3e5   :  { %v671_v62 = vpop.f32.mrf.mxu3 }
 0x3e6   :  { %v695_v63 = vadd.f32 %v671_v62, %v589_v61 }
 0x3e8   :  { %v703_v1 = vmax.f32 %v695_v63, 0.0 }
 0x3ea   :  { %747 = vmatmul.f32.vlgmr.msra.gmra.mxu0 %v703_v1 }
 0x3ed   :  { %v674_v4 = vpop.f32.mrf.mxu3 }
 0x3ee   :  { %v696_v5 = vadd.f32 %v674_v4, %v590_v3  ;;  %v1080_v3 = vld [vmem:[#allocation2] sm:$0xff]  ;;  %v1081_v4 = vld [vmem:[#allocation2 + $0x8] sm:$0xff] }
 0x3f0   :  { %v704_v6 = vmax.f32 %v696_v5, 0.0  ;;  %v1082_v5 = vld [vmem:[#allocation2 + $0x10] sm:$0xff] }
 0x3f2   :  { %750 = vmatmul.f32.gmra.mxu0 %v704_v6 }
 0x3f5   :  { %v677_v14 = vpop.f32.mrf.mxu3 }
 0x3f6   :  { %v697_v15 = vadd.f32 %v677_v14, %v591_v13  ;;  %v1086_v13 = vld [vmem:[#allocation2 + $0x30] sm:$0xff]  ;;  %v934_v14 = vld [vmem:[#allocation10 + $0x178] sm:$0xff] }
 0x3f7   :  { %935 = vmatpush.msrb.mxu0 %v934_v14 }
 0x3f8   :  { %v705_v16 = vmax.f32 %v697_v15, 0.0  ;;  %v933_v15 = vld [vmem:[#allocation10 + $0x170] sm:$0xff] }
 0x3f9   :  { %936 = vmatpush.msrb.mxu0 %v933_v15 }
 0x3fa   :  { %753 = vmatmul.f32.gmra.mxu0 %v705_v16 }
 0x3fd   :  { %v680_v21 = vpop.f32.mrf.mxu3 }
 0x3fe   :  { %v698_v22 = vadd.f32 %v680_v21, %v592_v19  ;;  %v929_v19 = vld [vmem:[#allocation10 + $0x150] sm:$0xff]  ;;  %v928_v21 = vld [vmem:[#allocation10 + $0x148] sm:$0xff] }
 0x400   :  { %v706_v23 = vmax.f32 %v698_v22, 0.0  ;;  %v927_v22 = vld [vmem:[#allocation10 + $0x140] sm:$0xff] }
 0x402   :  { %756 = vmatmul.f32.gmra.mxu0 %v706_v23 }
 0x405   :  { %v683_v27 = vpop.f32.mrf.mxu3 }
 0x406   :  { %v699_v28 = vadd.f32 %v683_v27, %v593_v25  ;;  %v923_v25 = vld [vmem:[#allocation10 + $0x120] sm:$0xff]  ;;  %v921_v27 = vld [vmem:[#allocation10 + $0x110] sm:$0xff] }
 0x408   :  { %v707_v30 = vmax.f32 %v699_v28, 0.0  ;;  %v920_v28 = vld [vmem:[#allocation10 + $0x108] sm:$0xff] }
 0x40a   :  { %759 = vmatmul.f32.gmra.mxu0 %v707_v30 }
 0x40d   :  { %v686_v33 = vpop.f32.mrf.mxu3 }
 0x40e   :  { %v700_v34 = vadd.f32 %v686_v33, %v594_v32 }
 0x410   :  { %v708_v36 = vmax.f32 %v700_v34, 0.0 }
 0x412   :  { %762 = vmatmul.f32.gmra.mxu0 %v708_v36 }
 0x415   :  { %v689_v40 = vpop.f32.mrf.mxu3 }
 0x416   :  { %v701_v41 = vadd.f32 %v689_v40, %v595_v39 }
 0x418   :  { %v709_v42 = vmax.f32 %v701_v41, 0.0 }
 0x41a   :  { %765 = vmatmul.f32.gmra.mxu0 %v709_v42 }
 0x41d   :  { %v692_v47 = vpop.f32.mrf.mxu3 }
 0x41e   :  { %v702_v48 = vadd.f32 %v692_v47, %v596_v46 }
 0x420   :  { %v710_v49 = vmax.f32 %v702_v48, 0.0 }
 0x422   :  { %768 = vmatmul.f32.gmra.mxu0 %v710_v49  ;;  %780 = vmatpush.msrb.mxu2 %v710_v49 }
 0x424   :  { %781 = vmatpush.msrb.mxu2 %v709_v42 }
 0x426   :  { %782 = vmatpush.msrb.mxu2 %v708_v36 }
 0x428   :  { %783 = vmatpush.msrb.mxu2 %v707_v30  ;;  %v919_v30 = vld [vmem:[#allocation10 + $0x100] sm:$0xff] }
 0x42a   :  { %784 = vmatpush.msrb.mxu2 %v706_v23  ;;  %v926_v23 = vld [vmem:[#allocation10 + $0x138] sm:$0xff] }
 0x42c   :  { %785 = vmatpush.msrb.mxu2 %v705_v16  ;;  %v932_v16 = vld [vmem:[#allocation10 + $0x168] sm:$0xff] }
 0x42d   :  { %937 = vmatpush.msrb.mxu0 %v932_v16 }
 0x42e   :  { %786 = vmatpush.msrb.mxu2 %v704_v6  ;;  %v1083_v6 = vld [vmem:[#allocation2 + $0x18] sm:$0xff] }
 0x42f   :  { %938 = vmatpush.msrb.mxu0 %v931_v17 }
 0x430   :  { %787 = vmatpush.msrb.mxu2 %v703_v1 }
 0x431   :  { %1045 = vmatmul.msk.f32.vlgmr.msrb.gmra.mxu2 %vm185_vm0, %v1345_v8  ;;  %v828_v8 = vld [vmem:[#allocation10 + $0xf8] sm:$0xff]  ;;  %939 = vmatpush.msrb.mxu0 %v930_v18 }
 0x432   :  { %829 = vmatpush.msrb.mxu1 %v828_v8 }
 0x433   :  { %940 = vmatpush.msrb.mxu0 %v929_v19 }
 0x435   :  { %941 = vmatpush.msrb.mxu0 %v928_v21 }
 0x437   :  { %942 = vmatpush.msrb.mxu0 %v927_v22 }
 0x439   :  { %1046 = vmatmul.msk.f32.gmra.mxu2 %vm185_vm0, %v1350_v9  ;;  %v827_v9 = vld [vmem:[#allocation10 + $0xf0] sm:$0xff]  ;;  %943 = vmatpush.msrb.mxu0 %v926_v23 }
 0x43a   :  { %830 = vmatpush.msrb.mxu1 %v827_v9  ;;  %v1079_v9 = vld [vmem:[%s1486_s7] ss:$0 sm:$0xff]  ;;  %s1246_s7 = smov [#allocation11]  }
 0x43b   :  { %944 = vmatpush.msrb.mxu0 %v925_v24  ;;  %s996_s9 = sshll.u32 %s1246_s7, 4  ;;  %s997_s9 = int_to_ptr.vmem [resolvable:$true] %s996_s9 }
 0x441   :  { %1047 = vmatmul.msk.f32.gmra.mxu2 %vm185_vm0, %v1354_v10  ;;  %v826_v10 = vld [vmem:[#allocation10 + $0xe8] sm:$0xff] }
 0x442   :  { %831 = vmatpush.msrb.mxu1 %v826_v10 }
 0x444   :  { %832 = vmatpush.msrb.mxu1 %v825_v50 }
 0x449   :  { %1048 = vmatmul.msk.f32.gmra.mxu2 %vm185_vm0, %v1358_v11  ;;  %v824_v11 = vld [vmem:[#allocation10 + $0xd8] sm:$0xff] }
 0x44a   :  { %833 = vmatpush.msrb.mxu1 %v824_v11 }
 0x451   :  { %1049 = vmatmul.msk.f32.gmra.mxu2 %vm185_vm0, %v1362_v20  ;;  %v823_v20 = vld [vmem:[#allocation10 + $0xd0] sm:$0xff] }
 0x452   :  { %834 = vmatpush.msrb.mxu1 %v823_v20 }
 0x454   :  { %835 = vmatpush.msrb.mxu1 %v822_v51 }
 0x459   :  { %1050 = vmatmul.msk.f32.gmra.mxu2 %vm185_vm0, %v1366_v29  ;;  %v821_v29 = vld [vmem:[#allocation10 + $0xc0] sm:$0xff] }
 0x45a   :  { %836 = vmatpush.msrb.mxu1 %v821_v29 }
 0x45c   :  { %837 = vmatpush.msrb.mxu1 %v820_v52 }
 0x461   :  { %1051 = vmatmul.msk.f32.gmra.mxu2 %vm185_vm0, %v1370_v38  ;;  %v819_v38 = vld [vmem:[#allocation10 + $0xb0] sm:$0xff] }
 0x462   :  { %838 = vmatpush.msrb.mxu1 %v819_v38 }
 0x464   :  { %839 = vmatpush.msrb.mxu1 %v818_v53 }
 0x466   :  { %840 = vmatpush.msrb.mxu1 %v817_v54 }
 0x467   :  { %v748_v37 = vpop.f32.mrf.mxu0 }
 0x468   :  { %841 = vmatpush.msrb.mxu1 %v816_v55  ;;  %v749_v10 = vadd.f32 %v1079_v9, %v748_v37 }
 0x469   :  { %1052 = vmatmul.msk.f32.gmra.mxu2 %vm185_vm0, %v1374_v44 }
 0x46a   :  { %842 = vmatpush.msrb.mxu1 %v815_v56 }
 0x46c   :  { %843 = vmatpush.msrb.mxu1 %v814_v57 }
 0x46e   :  { %844 = vmatpush.msrb.mxu1 %v813_v58 }
 0x46f   :  { %v751_v41 = vpop.f32.mrf.mxu0 }
 0x470   :  { %v752_v29 = vadd.f32 %v1079_v9, %v751_v41 }
 0x477   :  { %v754_v42 = vpop.f32.mrf.mxu0 }
 0x478   :  { %v755_v55 = vadd.f32 %v1079_v9, %v754_v42 }
 0x47f   :  { %v757_v43 = vpop.f32.mrf.mxu0 }
 0x487   :  { %v760_v45 = vpop.f32.mrf.mxu0 }
 0x48f   :  { %v763_v46 = vpop.f32.mrf.mxu0 }
 0x497   :  { %v766_v47 = vpop.f32.mrf.mxu0 }
 0x498   :  { %v767_v14 = vadd.f32 %v1079_v9, %v766_v47 }
 0x49f   :  { %v769_v49 = vpop.f32.mrf.mxu0 }
 0x4a0   :  { %v770_v19 = vadd.f32 %v1079_v9, %v769_v49 }
 0x4b4   :  { %v789_v59 = vpop.f32.mrf.mxu2 }
 0x4b5   :  { %845 = vmatmul.f32.vlgmr.msrb.gmra.mxu1 %v789_v59 }
 0x4bc   :  { %v792_v60 = vpop.f32.mrf.mxu2 }
 0x4bd   :  { %848 = vmatmul.f32.gmra.mxu1 %v792_v60 }
 0x4c4   :  { %v795_v61 = vpop.f32.mrf.mxu2 }
 0x4c5   :  { %851 = vmatmul.f32.gmra.mxu1 %v795_v61 }
 0x4cc   :  { %v798_v62 = vpop.f32.mrf.mxu2 }
 0x4cd   :  { %854 = vmatmul.f32.gmra.mxu1 %v798_v62 }
 0x4d4   :  { %v801_v63 = vpop.f32.mrf.mxu2 }
 0x4d5   :  { %857 = vmatmul.f32.gmra.mxu1 %v801_v63 }
 0x4dc   :  { %v804_v0 = vpop.f32.mrf.mxu2 }
 0x4dd   :  { %860 = vmatmul.f32.gmra.mxu1 %v804_v0 }
 0x4e4   :  { %v807_v1 = vpop.f32.mrf.mxu2 }
 0x4e5   :  { %863 = vmatmul.f32.gmra.mxu1 %v807_v1 }
 0x4ec   :  { %v810_v2 = vpop.f32.mrf.mxu2 }
 0x4ed   :  { %866 = vmatmul.f32.gmra.mxu1 %v810_v2  ;;  %886 = vmatpush.msrb.mxu3 %v810_v2 }
 0x4ef   :  { %887 = vmatpush.msrb.mxu3 %v807_v1 }
 0x4f1   :  { %888 = vmatpush.msrb.mxu3 %v804_v0  ;;  %v761_v0 = vadd.f32 %v1079_v9, %v760_v45 }
 0x4f3   :  { %889 = vmatpush.msrb.mxu3 %v801_v63 }
 0x4f5   :  { %890 = vmatpush.msrb.mxu3 %v798_v62 }
 0x4f7   :  { %891 = vmatpush.msrb.mxu3 %v795_v61 }
 0x4f9   :  { %892 = vmatpush.msrb.mxu3 %v792_v60 }
 0x4fb   :  { %893 = vmatpush.msrb.mxu3 %v789_v59  ;;  %v758_v59 = vadd.f32 %v1079_v9, %v757_v43 }
 0x4fc   :  { %1053 = vmatmul.msk.f32.vlgmr.msrb.gmra.mxu3 %vm185_vm0, %v1080_v3 }
 0x504   :  { %1054 = vmatmul.msk.f32.gmra.mxu3 %vm185_vm0, %v1081_v4 }
 0x50c   :  { %1055 = vmatmul.msk.f32.gmra.mxu3 %vm185_vm0, %v1082_v5  ;;  %v764_v5 = vadd.f32 %v1079_v9, %v763_v46 }
 0x514   :  { %1056 = vmatmul.msk.f32.gmra.mxu3 %vm185_vm0, %v1083_v6 }
 0x51c   :  { %1057 = vmatmul.msk.f32.gmra.mxu3 %vm185_vm0, %v1084_v7 }
 0x524   :  { %1058 = vmatmul.msk.f32.gmra.mxu3 %vm185_vm0, %v1085_v12 }
 0x52c   :  { %1059 = vmatmul.msk.f32.gmra.mxu3 %vm185_vm0, %v1086_v13 }
 0x532   :  { %v846_v48 = vpop.f32.mrf.mxu1 }
 0x533   :  { %v870_v50 = vadd.f32 %v846_v48, %v749_v10 }
 0x534   :  { %1060 = vmatmul.msk.f32.gmra.mxu3 %vm185_vm0, %v1374_v44  ;;  %v924_v44 = vld [vmem:[#allocation10 + $0x128] sm:$0xff] }
 0x535   :  { %945 = vmatpush.msrb.mxu0 %v924_v44 }
 0x537   :  { %946 = vmatpush.msrb.mxu0 %v923_v25 }
 0x539   :  { %947 = vmatpush.msrb.mxu0 %v922_v26 }
 0x53a   :  { %v849_v8 = vpop.f32.mrf.mxu1 }
 0x53b   :  { %948 = vmatpush.msrb.mxu0 %v921_v27  ;;  %v871_v52 = vadd.f32 %v849_v8, %v752_v29 }
 0x53d   :  { %949 = vmatpush.msrb.mxu0 %v920_v28 }
 0x53f   :  { %950 = vmatpush.msrb.mxu0 %v919_v30 }
 0x542   :  { %v852_v51 = vpop.f32.mrf.mxu1 }
 0x543   :  { %v872_v56 = vadd.f32 %v852_v51, %v755_v55 }
 0x54a   :  { %v855_v54 = vpop.f32.mrf.mxu1 }
 0x54b   :  { %v873_v61 = vadd.f32 %v855_v54, %v758_v59 }
 0x552   :  { %v858_v60 = vpop.f32.mrf.mxu1 }
 0x553   :  { %v874_v1 = vadd.f32 %v858_v60, %v761_v0 }
 0x55a   :  { %v861_v2 = vpop.f32.mrf.mxu1 }
 0x55b   :  { %v875_v6 = vadd.f32 %v861_v2, %v764_v5 }
 0x562   :  { %v864_v13 = vpop.f32.mrf.mxu1 }
 0x563   :  { %v876_v15 = vadd.f32 %v864_v13, %v767_v14 }
 0x56a   :  { %v867_v18 = vpop.f32.mrf.mxu1 }
 0x56b   :  { %v877_v21 = vadd.f32 %v867_v18, %v770_v19 }
 0x57f   :  { %v895_v31 = vpop.f32.mrf.mxu3 }
 0x580   :  { %951 = vmatmul.f32.vlgmr.msrb.gmra.mxu0 %v895_v31 }
 0x587   :  { %v898_v32 = vpop.f32.mrf.mxu3 }
 0x588   :  { %954 = vmatmul.f32.gmra.mxu0 %v898_v32 }
 0x58f   :  { %v901_v33 = vpop.f32.mrf.mxu3 }
 0x590   :  { %957 = vmatmul.f32.gmra.mxu0 %v901_v33 }
 0x597   :  { %v904_v34 = vpop.f32.mrf.mxu3 }
 0x598   :  { %960 = vmatmul.f32.gmra.mxu0 %v904_v34 }
 0x59f   :  { %v907_v35 = vpop.f32.mrf.mxu3 }
 0x5a0   :  { %963 = vmatmul.f32.gmra.mxu0 %v907_v35 }
 0x5a7   :  { %v910_v36 = vpop.f32.mrf.mxu3 }
 0x5a8   :  { %966 = vmatmul.f32.gmra.mxu0 %v910_v36 }
 0x5af   :  { %v913_v39 = vpop.f32.mrf.mxu3 }
 0x5b0   :  { %969 = vmatmul.f32.gmra.mxu0 %v913_v39 }
 0x5b7   :  { %v916_v40 = vpop.f32.mrf.mxu3 }
 0x5b8   :  { %972 = vmatmul.f32.gmra.mxu0 %v916_v40 }
 0x5fd   :  { %v952_v11 = vpop.f32.mrf.mxu0 }
 0x5fe   :  { %v976_v20 = vadd.f32 %v952_v11, %v870_v50 }
 0x600   :  { %984 = vst [vmem:[#allocation11] sm:$0xff] %v976_v20 }
 0x605   :  { %v955_v38 = vpop.f32.mrf.mxu0 }
 0x606   :  { %v977_v53 = vadd.f32 %v955_v38, %v871_v52 }
 0x608   :  { %985 = vst [vmem:[#allocation11 + $0x8] sm:$0xff] %v977_v53 }
 0x60d   :  { %v958_v57 = vpop.f32.mrf.mxu0 }
 0x60e   :  { %v978_v58 = vadd.f32 %v958_v57, %v872_v56 }
 0x610   :  { %986 = vst [vmem:[#allocation11 + $0x10] sm:$0xff] %v978_v58 }
 0x615   :  { %v961_v62 = vpop.f32.mrf.mxu0 }
 0x616   :  { %v979_v63 = vadd.f32 %v961_v62, %v873_v61 }
 0x618   :  { %987 = vst [vmem:[#allocation11 + $0x18] sm:$0xff] %v979_v63 }
 0x61d   :  { %v964_v3 = vpop.f32.mrf.mxu0 }
 0x61e   :  { %v980_v4 = vadd.f32 %v964_v3, %v874_v1 }
 0x620   :  { %988 = vst [vmem:[#allocation11 + $0x20] sm:$0xff] %v980_v4 }
 0x625   :  { %v967_v7 = vpop.f32.mrf.mxu0 }
 0x626   :  { %v981_v12 = vadd.f32 %v967_v7, %v875_v6 }
 0x628   :  { %989 = vst [vmem:[#allocation11 + $0x28] sm:$0xff] %v981_v12 }
 0x62d   :  { %v970_v16 = vpop.f32.mrf.mxu0 }
 0x62e   :  { %v982_v17 = vadd.f32 %v970_v16, %v876_v15 }
 0x630   :  { %990 = vst [vmem:[#allocation11 + $0x30] sm:$0xff] %v982_v17 }
 0x635   :  { %v973_v22 = vpop.f32.mrf.mxu0 }
 0x636   :  { %v983_v23 = vadd.f32 %v973_v22, %v877_v21 }
 0x638   :  { %991 = vst [vmem:[#allocation11 + $0x38] sm:$0xff] %v983_v23 }
 0x639   :  { %1004 = dma.vmem_to_hbm [thread:$0]  %s997_s9, 1024, %s999_s12, [#allocation4], %s1240_s13, %s1240_s13, %s1241_s14  }
 0x63a   :  { %1237 = dma.done.wait [#allocation4], 1024  }
 0x63b   :  { %1238 = vsyncadd [#allocation4], 4294966272 }
 0x63c   :  { %1009 = vsyncpa [#allocation3], 1 }
 0x63d   :  { %1010 = vsyncpa [#allocation6], 1 }
 0x63e   :  { %1011 = vsyncpa [#allocation9], 1 }
 0x63f   :  { %1012 = vsyncpa [#allocation4], 1 }

</bundles_post_ra>
